<compile_context>
chip_gen: v7x
topology: tpu7x:2x2x1
jax: 0.10.0
libtpu: 0.0.40
codegen_flags: <defaults>
</compile_context>

<pallas_src>
import functools

import numpy as np
import jax
import jax.numpy as jnp
from jax import lax
from jax.experimental import pallas as pl
from jax.experimental.pallas import tpu as pltpu

# ----------------- tiny BERT config -----------------
VOCAB = 64
HIDDEN = 32
N_LAYERS = 2
N_HEADS = 4
HEAD_DIM = HIDDEN // N_HEADS
INTERMEDIATE = 64
MAX_POS = 16
TYPE_VOCAB = 2
LN_EPS = 1e-12
MARGIN = 0.1
COS_EPS = 1e-8
ATT_SCALE = 1.0 / float(np.sqrt(HEAD_DIM))


# ----------------- in-kernel helpers -----------------
def _ln(x, g, b):
    mu = jnp.mean(x, axis=-1, keepdims=True)
    var = jnp.mean((x - mu) ** 2, axis=-1, keepdims=True)
    return (x - mu) * lax.rsqrt(var + LN_EPS) * g + b


def _gelu_tanh(x):
    # TODO(synk): HF BERT uses exact erf-GELU; tanh approximation used for guaranteed Mosaic lowering.
    c = 0.7978845608028654  # sqrt(2/pi)
    return 0.5 * x * (1.0 + jnp.tanh(c * (x + 0.044715 * x * x * x)))


# ----------------- fused encoder-layer kernel -----------------
def _fused_layer_kernel(x_ref, bias_ref, wqkv_ref, bqkv_ref, wo_ref, bo_ref,
                        ln1g_ref, ln1b_ref, w1_ref, b1_ref, w2_ref, b2_ref,
                        ln2g_ref, ln2b_ref, out_ref, ctx_sc):
    """grid = (batch, layer).  out_ref is the resident activation carried across layers."""
    layer = pl.program_id(1)

    @pl.when(layer == 0)
    def _():
        out_ref[0] = x_ref[0]          # load embedded hidden state once per batch element

    x = out_ref[0]                     # (S, H)
    bias = bias_ref[0]                 # (1, S) additive key mask (broadcast over query rows)

    # Fused QKV projection + bias: (S, H) @ (H, 3H)
    qkv = jnp.dot(x, wqkv_ref[0], preferred_element_type=jnp.float32) + bqkv_ref[0]

    # All heads processed in this single invocation (statically unrolled loop).
    for h in range(N_HEADS):
        q = qkv[:, h * HEAD_DIM:(h + 1) * HEAD_DIM]
        k = qkv[:, HIDDEN + h * HEAD_DIM:HIDDEN + (h + 1) * HEAD_DIM]
        v = qkv[:, 2 * HIDDEN + h * HEAD_DIM:2 * HIDDEN + (h + 1) * HEAD_DIM]
        # q @ k^T without an explicit transpose: contract last dims of both.
        s = lax.dot_general(q, k, (((1,), (1,)), ((), ())),
                            preferred_element_type=jnp.float32) * ATT_SCALE + bias
        m = jnp.max(s, axis=-1, keepdims=True)
        p = jnp.exp(s - m)
        p = p * pl.reciprocal(jnp.sum(p, axis=-1, keepdims=True), approx=True)
        ctx_sc[:, h * HEAD_DIM:(h + 1) * HEAD_DIM] = jnp.dot(
            p, v, preferred_element_type=jnp.float32)

    attn_out = jnp.dot(ctx_sc[...], wo_ref[0],
                       preferred_element_type=jnp.float32) + bo_ref[0]
    x = _ln(x + attn_out, ln1g_ref[0], ln1b_ref[0])

    hmid = _gelu_tanh(jnp.dot(x, w1_ref[0],
                              preferred_element_type=jnp.float32) + b1_ref[0])
    x = _ln(x + jnp.dot(hmid, w2_ref[0],
                        preferred_element_type=jnp.float32) + b2_ref[0],
            ln2g_ref[0], ln2b_ref[0])

    out_ref[0] = x


def fused_bert_layers(x, bias, p):
    """x: (B, S, H) post-embedding hidden; bias: (B, 1, S) additive mask; p: stacked layer params."""
    B, S, H = x.shape
    NL = p["wqkv"].shape[0]

    def xmap(b, l):  # batch-indexed tensors
        return (b, 0, 0)

    def lmap(b, l):  # layer-indexed (stacked) weights
        return (l, 0, 0)

    in_specs = [
        pl.BlockSpec((1, S, H), xmap),                    # x (embedded hidden)
        pl.BlockSpec((1, 1, S), xmap),                    # attention additive bias
        pl.BlockSpec((1, H, 3 * H), lmap),                # wqkv
        pl.BlockSpec((1, 1, 3 * H), lmap),                # bqkv
        pl.BlockSpec((1, H, H), lmap),                    # wo
        pl.BlockSpec((1, 1, H), lmap),                    # bo
        pl.BlockSpec((1, 1, H), lmap),                    # ln1 gamma
        pl.BlockSpec((1, 1, H), lmap),                    # ln1 beta
        pl.BlockSpec((1, H, INTERMEDIATE), lmap),         # ffn w1
        pl.BlockSpec((1, 1, INTERMEDIATE), lmap),         # ffn b1
        pl.BlockSpec((1, INTERMEDIATE, H), lmap),         # ffn w2
        pl.BlockSpec((1, 1, H), lmap),                    # ffn b2
        pl.BlockSpec((1, 1, H), lmap),                    # ln2 gamma
        pl.BlockSpec((1, 1, H), lmap),                    # ln2 beta
    ]
    return pl.pallas_call(
        _fused_layer_kernel,
        grid=(B, NL),
        in_specs=in_specs,
        out_specs=pl.BlockSpec((1, S, H), xmap),
        out_shape=jax.ShapeDtypeStruct((B, S, H), jnp.float32),
        scratch_shapes=[pltpu.VMEM((S, H), jnp.float32)],
        compiler_params=pltpu.CompilerParams(
            dimension_semantics=("parallel", "arbitrary")),
    )(x, bias, p["wqkv"], p["bqkv"], p["wo"], p["bo"],
      p["ln1_g"], p["ln1_b"], p["w1"], p["b1"], p["w2"], p["b2"],
      p["ln2_g"], p["ln2_b"])


# ----------------- LMCL / cosine kernels -----------------
def _lmcl_loss_kernel(rep_ref, labt_ref, labn_ref, onehot_ref, mean_ref, sum_ref):
    rep = rep_ref[...]                                                     # (B, H)
    dot = jnp.dot(rep, labt_ref[...], preferred_element_type=jnp.float32)  # (B, L)
    rep_n = jnp.sqrt(jnp.sum(rep * rep, axis=1, keepdims=True))            # (B, 1)
    denom = jnp.maximum(rep_n * labn_ref[...], COS_EPS)                    # (B, L)
    cos_table = dot * pl.reciprocal(denom, approx=True)

    # LMCL loss exactly as in the PyTorch reference (nonstandard but faithful).
    exp_cos = jnp.exp(cos_table)
    all_sum = jnp.sum(exp_cos, axis=1, keepdims=True) - MARGIN             # (B, 1)
    cos_t = jnp.sum(cos_table * onehot_ref[...], axis=1, keepdims=True)    # (B, 1)
    e_t_m = jnp.exp(cos_t - MARGIN)
    e_t = jnp.exp(cos_t)
    prob = e_t_m / (e_t_m + all_sum - e_t) + 1e-08
    loss = -jnp.log(prob)                                                  # (B, 1)
    mean_ref[...] = jnp.mean(loss, keepdims=True)
    sum_ref[...] = jnp.sum(loss, keepdims=True)


def pallas_lmcl_loss(rep, label_map_t, label_norm, onehot):
    return pl.pallas_call(
        _lmcl_loss_kernel,
        out_shape=(jax.ShapeDtypeStruct((1, 1), jnp.float32),   # loss mean
                   jax.ShapeDtypeStruct((1, 1), jnp.float32)),  # loss sum
    )(rep, label_map_t, label_norm, onehot)


def _cosine_kernel(rep_ref, labt_ref, labn_ref, cos_ref):
    rep = rep_ref[...]
    dot = jnp.dot(rep, labt_ref[...], preferred_element_type=jnp.float32)
    rep_n = jnp.sqrt(jnp.sum(rep * rep, axis=1, keepdims=True))
    denom = jnp.maximum(rep_n * labn_ref[...], COS_EPS)
    cos_ref[...] = dot * pl.reciprocal(denom, approx=True)


def pallas_cosine_table(rep, label_map_t, label_norm):
    B = rep.shape[0]
    L = label_map_t.shape[1]
    return pl.pallas_call(
        _cosine_kernel,
        out_shape=jax.ShapeDtypeStruct((B, L), jnp.float32),
    )(rep, label_map_t, label_norm)


# ----------------- tiny BERT encoder (glue + fused Pallas layers) -----------------
def init_bert_params(key):
    keys = jax.random.split(key, 8)
    ki = iter(keys)

    def norm(shape):
        return 0.02 * jax.random.normal(next(ki), shape, jnp.float32)

    return {
        "word_emb": norm((VOCAB, HIDDEN)),
        "pos_emb": norm((MAX_POS, HIDDEN)),
        "type_emb": norm((TYPE_VOCAB, HIDDEN)),
        "emb_ln_g": jnp.ones((HIDDEN,), jnp.float32),
        "emb_ln_b": jnp.zeros((HIDDEN,), jnp.float32),
        # per-layer weights stacked along a leading layer axis, QKV fused to (H, 3H)
        "wqkv": norm((N_LAYERS, HIDDEN, 3 * HIDDEN)),
        "bqkv": jnp.zeros((N_LAYERS, 1, 3 * HIDDEN), jnp.float32),
        "wo": norm((N_LAYERS, HIDDEN, HIDDEN)),
        "bo": jnp.zeros((N_LAYERS, 1, HIDDEN), jnp.float32),
        "ln1_g": jnp.ones((N_LAYERS, 1, HIDDEN), jnp.float32),
        "ln1_b": jnp.zeros((N_LAYERS, 1, HIDDEN), jnp.float32),
        "w1": norm((N_LAYERS, HIDDEN, INTERMEDIATE)),
        "b1": jnp.zeros((N_LAYERS, 1, INTERMEDIATE), jnp.float32),
        "w2": norm((N_LAYERS, INTERMEDIATE, HIDDEN)),
        "b2": jnp.zeros((N_LAYERS, 1, HIDDEN), jnp.float32),
        "ln2_g": jnp.ones((N_LAYERS, 1, HIDDEN), jnp.float32),
        "ln2_b": jnp.zeros((N_LAYERS, 1, HIDDEN), jnp.float32),
    }


def bert_encode(params, input_ids, attention_mask, token_type_ids):
    B, S = input_ids.shape
    x = (jnp.take(params["word_emb"], input_ids, axis=0)
         + params["pos_emb"][None, :S, :]
         + jnp.take(params["type_emb"], token_type_ids, axis=0))
    mu = jnp.mean(x, axis=-1, keepdims=True)
    var = jnp.mean((x - mu) ** 2, axis=-1, keepdims=True)
    x = (x - mu) * lax.rsqrt(var + LN_EPS) * params["emb_ln_g"] + params["emb_ln_b"]
    bias = ((1.0 - attention_mask.astype(jnp.float32)) * -10000.0)[:, None, :]   # (B,1,S)
    return fused_bert_layers(x.astype(jnp.float32), bias, params)                # (B, S, H)


# ----------------- jitted device paths -----------------
@jax.jit
def _encode_labels_jit(response_params, label_token_ids):
    mask = jnp.ones_like(label_token_ids)
    types = jnp.zeros_like(label_token_ids)
    hidden = bert_encode(response_params, label_token_ids, mask, types)
    label_map = hidden[:, 0, :]                                              # (L, H) CLS reps
    label_map_t = label_map.T                                                # cached (H, L)
    label_norm = jnp.sqrt(jnp.sum(label_map * label_map, axis=1))[None, :]   # cached (1, L)
    return label_map, label_map_t, label_norm


@jax.jit
def _train_forward_jit(dialog_params, input_ids, attention_mask, token_type_ids,
                       label_map_t, label_norm, label_map_id):
    hidden = bert_encode(dialog_params, input_ids, attention_mask, token_type_ids)
    rep = hidden[:, 0, :]                                                    # (B, H)
    onehot = jax.nn.one_hot(label_map_id, label_map_t.shape[1], dtype=jnp.float32)
    loss_mean, loss_sum = pallas_lmcl_loss(rep, label_map_t, label_norm, onehot)
    return loss_mean[0, 0], loss_sum[0, 0]


@jax.jit
def _test_forward_jit(dialog_params, input_ids, attention_mask, token_type_ids,
                      label_map_t, label_norm):
    hidden = bert_encode(dialog_params, input_ids, attention_mask, token_type_ids)
    rep = hidden[:, 0, :]
    return pallas_cosine_table(rep, label_map_t, label_norm)


# ----------------- TextMatchBert (JAX/Pallas) -----------------
class TextMatchBertPallas:
    def __init__(self, key):
        k1, k2 = jax.random.split(key)
        self.dialog_params = init_bert_params(k1)      # dialog_encoder
        self.response_params = init_bert_params(k2)    # response_encoder (frozen in torch)
        self.label_map = None                          # (L, H)
        self._label_map_t = None                       # cached (H, L)
        self._label_norm = None                        # cached (1, L)
        self.m = MARGIN

    def get_answer_rp(self, label_token_ids):
        # label_token_ids: (L, S_lab) int32; mask = ones, type = zeros (as in the torch code)
        label_map, label_map_t, label_norm = _encode_labels_jit(
            self.response_params, jnp.asarray(label_token_ids, dtype=jnp.int32))
        self.label_map = label_map
        self._label_map_t = label_map_t
        self._label_norm = label_norm

    @staticmethod
    def _make_aux_input_tensors(ids_np, sent_len):
        # Host-side loop, as in the reference module (kept out of the jitted path).
        token_type_ids = np.zeros(ids_np.shape, dtype=np.int32)
        for bs_id, turn_len in enumerate(sent_len):
            type_id = 0
            last_index = 0
            for turn in turn_len:
                curr_index = last_index + turn
                if type_id == 0:
                    type_id = 1
                else:
                    token_type_ids[bs_id, last_index:curr_index] = 1
                    type_id = 0
                last_index = curr_index
        attention_mask = (ids_np > 0).astype(np.int32)
        return jnp.asarray(token_type_ids), jnp.asarray(attention_mask)

    def forward(self, phase, input_ids, input_len, labels=None, label_len=None, label_map_id=None):
        ids_np = np.asarray(input_ids)
        token_type_ids, attention_mask = self._make_aux_input_tensors(ids_np, input_len)
        input_ids = jnp.asarray(ids_np, dtype=jnp.int32)

        if phase.lower() in {"train", "dev"}:
            loss_mean, loss_sum = _train_forward_jit(
                self.dialog_params, input_ids, attention_mask, token_type_ids,
                self._label_map_t, self._label_norm,
                jnp.asarray(label_map_id, dtype=jnp.int32))
            bs = int(ids_np.shape[0])
            return loss_mean, (loss_sum, bs)
        elif phase.lower() in {"test"}:
            cos_table = _test_forward_jit(
                self.dialog_params, input_ids, attention_mask, token_type_ids,
                self._label_map_t, self._label_norm)
            return [list(map(float, row)) for row in np.asarray(cos_table)]


# ----------------- main -----------------
if __name__ == "__main__":
    key = jax.random.PRNGKey(0)
    kmodel, kdata, klabels = jax.random.split(key, 3)

    model = TextMatchBertPallas(kmodel)

    B, S = 2, 8
    L, S_LAB = 16, 6

    # input ids: 6 real tokens then 2 pad tokens (id 0) per sample
    ids = jax.random.randint(kdata, (B, S), 1, VOCAB, dtype=jnp.int32)
    pad = np.ones((B, S), dtype=np.int32)
    pad[:, 6:] = 0
    input_ids = ids * jnp.asarray(pad)
    input_len = [[3, 3], [4, 2]]                        # per-sample turn lengths

    # label token ids -> label_map via response encoder (get_answer_rp)
    label_tokens = jax.random.randint(klabels, (L, S_LAB), 1, VOCAB, dtype=jnp.int32)
    model.get_answer_rp(label_tokens)

    label_map_id = [3, 7]
    loss_mean, (loss_sum, bs) = model.forward(
        "train", input_ids, input_len, labels=None, label_len=None, label_map_id=label_map_id)

    jax.block_until_ready(loss_mean)
    jax.block_until_ready(loss_sum)

    # also exercise the test branch once (cosine-only kernel, no dummy loss math)
    cos_scores = model.forward("test", input_ids, input_len)
    assert len(cos_scores) == B and len(cos_scores[0]) == L

    print("KERNEL_OK")
</pallas_src>

<mosaic_0001>
module attributes {stable_mosaic.version = 11 : i64} {
  func.func @_fused_layer_kernel(%arg0: i32, %arg1: i32, %arg2: memref<1x6x32xf32, #tpu.memory_space<vmem>>, %arg3: memref<1x1x6xf32, #tpu.memory_space<vmem>>, %arg4: memref<1x32x96xf32, #tpu.memory_space<vmem>>, %arg5: memref<1x1x96xf32, #tpu.memory_space<vmem>>, %arg6: memref<1x32x32xf32, #tpu.memory_space<vmem>>, %arg7: memref<1x1x32xf32, #tpu.memory_space<vmem>>, %arg8: memref<1x1x32xf32, #tpu.memory_space<vmem>>, %arg9: memref<1x1x32xf32, #tpu.memory_space<vmem>>, %arg10: memref<1x32x64xf32, #tpu.memory_space<vmem>>, %arg11: memref<1x1x64xf32, #tpu.memory_space<vmem>>, %arg12: memref<1x64x32xf32, #tpu.memory_space<vmem>>, %arg13: memref<1x1x32xf32, #tpu.memory_space<vmem>>, %arg14: memref<1x1x32xf32, #tpu.memory_space<vmem>>, %arg15: memref<1x1x32xf32, #tpu.memory_space<vmem>>, %arg16: memref<1x6x32xf32, #tpu.memory_space<vmem>>, %arg17: memref<6x32xf32, #tpu.memory_space<vmem>>) attributes {dimension_semantics = [#tpu.dimension_semantics<parallel>, #tpu.dimension_semantics<arbitrary>], iteration_bounds = array<i64: 16, 2>, scalar_prefetch = 0 : i64, scratch_operands = 1 : i64, tpu.core_type = #tpu.core_type<tc>, window_params = [{transform_indices = @transform_0, window_bounds = array<i64: 1, 6, 32>}, {transform_indices = @transform_1, window_bounds = array<i64: 1, 1, 6>}, {transform_indices = @transform_2, window_bounds = array<i64: 1, 32, 96>}, {transform_indices = @transform_3, window_bounds = array<i64: 1, 1, 96>}, {transform_indices = @transform_4, window_bounds = array<i64: 1, 32, 32>}, {transform_indices = @transform_5, window_bounds = array<i64: 1, 1, 32>}, {transform_indices = @transform_6, window_bounds = array<i64: 1, 1, 32>}, {transform_indices = @transform_7, window_bounds = array<i64: 1, 1, 32>}, {transform_indices = @transform_8, window_bounds = array<i64: 1, 32, 64>}, {transform_indices = @transform_9, window_bounds = array<i64: 1, 1, 64>}, {transform_indices = @transform_10, window_bounds = array<i64: 1, 64, 32>}, {transform_indices = @transform_11, window_bounds = array<i64: 1, 1, 32>}, {transform_indices = @transform_12, window_bounds = array<i64: 1, 1, 32>}, {transform_indices = @transform_13, window_bounds = array<i64: 1, 1, 32>}, {transform_indices = @transform_14, window_bounds = array<i64: 1, 6, 32>}]} {
    %c0_i32 = arith.constant 0 : i32
    %0 = arith.cmpi eq, %arg1, %c0_i32 : i32
    %1 = arith.extui %0 : i1 to i32
    %c0_i32_0 = arith.constant 0 : i32
    %2 = arith.cmpi ne, %1, %c0_i32_0 : i32
    scf.if %2 {
      %c0_89 = arith.constant 0 : index
      %c0_90 = arith.constant 0 : index
      %c0_91 = arith.constant 0 : index
      %186 = vector.load %arg2[%c0_89, %c0_90, %c0_91] : memref<1x6x32xf32, #tpu.memory_space<vmem>>, vector<1x6x32xf32>
      %187 = vector.shape_cast %186 : vector<1x6x32xf32> to vector<6x32xf32>
      %c0_92 = arith.constant 0 : index
      %c0_93 = arith.constant 0 : index
      %c0_94 = arith.constant 0 : index
      %188 = vector.load %arg16[%c0_92, %c0_93, %c0_94] : memref<1x6x32xf32, #tpu.memory_space<vmem>>, vector<1x6x32xf32>
      %189 = vector.shape_cast %188 : vector<1x6x32xf32> to vector<6x32xf32>
      %190 = vector.shape_cast %187 : vector<6x32xf32> to vector<1x6x32xf32>
      tpu.vector_store %arg16[%c0_92, %c0_93, %c0_94], %190 {strides = array<i32>} : memref<1x6x32xf32, #tpu.memory_space<vmem>>, vector<1x6x32xf32>,
    } else {
    }
    %c0 = arith.constant 0 : index
    %c0_1 = arith.constant 0 : index
    %c0_2 = arith.constant 0 : index
    %3 = vector.load %arg16[%c0, %c0_1, %c0_2] : memref<1x6x32xf32, #tpu.memory_space<vmem>>, vector<1x6x32xf32>
    %4 = vector.shape_cast %3 : vector<1x6x32xf32> to vector<6x32xf32>
    %c0_3 = arith.constant 0 : index
    %c0_4 = arith.constant 0 : index
    %c0_5 = arith.constant 0 : index
    %5 = vector.load %arg3[%c0_3, %c0_4, %c0_5] : memref<1x1x6xf32, #tpu.memory_space<vmem>>, vector<1x1x6xf32>
    %6 = vector.shape_cast %5 : vector<1x1x6xf32> to vector<1x6xf32>
    %c0_6 = arith.constant 0 : index
    %c0_7 = arith.constant 0 : index
    %c0_8 = arith.constant 0 : index
    %7 = vector.load %arg4[%c0_6, %c0_7, %c0_8] : memref<1x32x96xf32, #tpu.memory_space<vmem>>, vector<1x32x96xf32>
    %8 = vector.shape_cast %7 : vector<1x32x96xf32> to vector<32x96xf32>
    %cst = arith.constant dense<0.000000e+00> : vector<6x96xf32>
    %9 = tpu.matmul %4, %8, %cst {dimension_numbers = #tpu.dot_dimension_numbers<[1], [0], [0], [1], [0, 0, 1, 1], [], []>} : vector<6x32xf32>, vector<32x96xf32>, vector<6x96xf32> -> vector<6x96xf32>
    %c0_9 = arith.constant 0 : index
    %c0_10 = arith.constant 0 : index
    %c0_11 = arith.constant 0 : index
    %10 = vector.load %arg5[%c0_9, %c0_10, %c0_11] : memref<1x1x96xf32, #tpu.memory_space<vmem>>, vector<1x1x96xf32>
    %11 = vector.shape_cast %10 : vector<1x1x96xf32> to vector<1x96xf32>
    %12 = vector.broadcast %11 : vector<1x96xf32> to vector<6x96xf32>
    %13 = arith.addf %9, %12 : vector<6x96xf32>
    %14 = vector.extract_strided_slice %13 {offsets = [0, 0], sizes = [6, 8], strides = [1, 1]} : vector<6x96xf32> to vector<6x8xf32>
    %15 = vector.extract_strided_slice %13 {offsets = [0, 32], sizes = [6, 8], strides = [1, 1]} : vector<6x96xf32> to vector<6x8xf32>
    %16 = vector.extract_strided_slice %13 {offsets = [0, 64], sizes = [6, 8], strides = [1, 1]} : vector<6x96xf32> to vector<6x8xf32>
    %cst_12 = arith.constant dense<0.000000e+00> : vector<6x6xf32>
    %17 = tpu.matmul %14, %15, %cst_12 {dimension_numbers = #tpu.dot_dimension_numbers<[1], [1], [0], [0], [0, 0, 1, 0], [], []>} : vector<6x8xf32>, vector<6x8xf32>, vector<6x6xf32> -> vector<6x6xf32>
    %cst_13 = arith.constant 0.353553385 : f32
    %18 = vector.broadcast %cst_13 : f32 to vector<6x6xf32>
    %19 = arith.mulf %17, %18 : vector<6x6xf32>
    %20 = vector.broadcast %6 : vector<1x6xf32> to vector<6x6xf32>
    %21 = arith.addf %19, %20 : vector<6x6xf32>
    %cst_14 = arith.constant dense<0xFF800000> : vector<6xf32>
    %22 = vector.multi_reduction <maximumf>, %21, %cst_14 [1] : vector<6x6xf32> to vector<6xf32>
    %23 = vector.shape_cast %22 : vector<6xf32> to vector<6x1xf32>
    %24 = vector.broadcast %23 : vector<6x1xf32> to vector<6x6xf32>
    %25 = arith.subf %21, %24 : vector<6x6xf32>
    %26 = math.exp %25 : vector<6x6xf32>
    %cst_15 = arith.constant dense<0.000000e+00> : vector<6xf32>
    %27 = vector.multi_reduction <add>, %26, %cst_15 [1] : vector<6x6xf32> to vector<6xf32>
    %28 = vector.shape_cast %27 : vector<6xf32> to vector<6x1xf32>
    %29 = tpu.reciprocal %28 {approx = true} : vector<6x1xf32> -> vector<6x1xf32>
    %30 = vector.broadcast %29 : vector<6x1xf32> to vector<6x6xf32>
    %31 = arith.mulf %26, %30 : vector<6x6xf32>
    %cst_16 = arith.constant dense<0.000000e+00> : vector<6x8xf32>
    %32 = tpu.matmul %31, %16, %cst_16 {dimension_numbers = #tpu.dot_dimension_numbers<[1], [0], [0], [1], [0, 0, 1, 1], [], []>} : vector<6x6xf32>, vector<6x8xf32>, vector<6x8xf32> -> vector<6x8xf32>
    %c0_17 = arith.constant 0 : index
    %c0_18 = arith.constant 0 : index
    %33 = vector.load %arg17[%c0_17, %c0_18] : memref<6x32xf32, #tpu.memory_space<vmem>>, vector<6x8xf32>
    tpu.vector_store %arg17[%c0_17, %c0_18], %32 {strides = array<i32>} : memref<6x32xf32, #tpu.memory_space<vmem>>, vector<6x8xf32>,
    %34 = vector.extract_strided_slice %13 {offsets = [0, 8], sizes = [6, 8], strides = [1, 1]} : vector<6x96xf32> to vector<6x8xf32>
    %35 = vector.extract_strided_slice %13 {offsets = [0, 40], sizes = [6, 8], strides = [1, 1]} : vector<6x96xf32> to vector<6x8xf32>
    %36 = vector.extract_strided_slice %13 {offsets = [0, 72], sizes = [6, 8], strides = [1, 1]} : vector<6x96xf32> to vector<6x8xf32>
    %cst_19 = arith.constant dense<0.000000e+00> : vector<6x6xf32>
    %37 = tpu.matmul %34, %35, %cst_19 {dimension_numbers = #tpu.dot_dimension_numbers<[1], [1], [0], [0], [0, 0, 1, 0], [], []>} : vector<6x8xf32>, vector<6x8xf32>, vector<6x6xf32> -> vector<6x6xf32>
    %cst_20 = arith.constant 0.353553385 : f32
    %38 = vector.broadcast %cst_20 : f32 to vector<6x6xf32>
    %39 = arith.mulf %37, %38 : vector<6x6xf32>
    %40 = vector.broadcast %6 : vector<1x6xf32> to vector<6x6xf32>
    %41 = arith.addf %39, %40 : vector<6x6xf32>
    %cst_21 = arith.constant dense<0xFF800000> : vector<6xf32>
    %42 = vector.multi_reduction <maximumf>, %41, %cst_21 [1] : vector<6x6xf32> to vector<6xf32>
    %43 = vector.shape_cast %42 : vector<6xf32> to vector<6x1xf32>
    %44 = vector.broadcast %43 : vector<6x1xf32> to vector<6x6xf32>
    %45 = arith.subf %41, %44 : vector<6x6xf32>
    %46 = math.exp %45 : vector<6x6xf32>
    %cst_22 = arith.constant dense<0.000000e+00> : vector<6xf32>
    %47 = vector.multi_reduction <add>, %46, %cst_22 [1] : vector<6x6xf32> to vector<6xf32>
    %48 = vector.shape_cast %47 : vector<6xf32> to vector<6x1xf32>
    %49 = tpu.reciprocal %48 {approx = true} : vector<6x1xf32> -> vector<6x1xf32>
    %50 = vector.broadcast %49 : vector<6x1xf32> to vector<6x6xf32>
    %51 = arith.mulf %46, %50 : vector<6x6xf32>
    %cst_23 = arith.constant dense<0.000000e+00> : vector<6x8xf32>
    %52 = tpu.matmul %51, %36, %cst_23 {dimension_numbers = #tpu.dot_dimension_numbers<[1], [0], [0], [1], [0, 0, 1, 1], [], []>} : vector<6x6xf32>, vector<6x8xf32>, vector<6x8xf32> -> vector<6x8xf32>
    %c0_24 = arith.constant 0 : index
    %c8 = arith.constant 8 : index
    %53 = vector.load %arg17[%c0_24, %c8] : memref<6x32xf32, #tpu.memory_space<vmem>>, vector<6x8xf32>
    tpu.vector_store %arg17[%c0_24, %c8], %52 {strides = array<i32>} : memref<6x32xf32, #tpu.memory_space<vmem>>, vector<6x8xf32>,
    %54 = vector.extract_strided_slice %13 {offsets = [0, 16], sizes = [6, 8], strides = [1, 1]} : vector<6x96xf32> to vector<6x8xf32>
    %55 = vector.extract_strided_slice %13 {offsets = [0, 48], sizes = [6, 8], strides = [1, 1]} : vector<6x96xf32> to vector<6x8xf32>
    %56 = vector.extract_strided_slice %13 {offsets = [0, 80], sizes = [6, 8], strides = [1, 1]} : vector<6x96xf32> to vector<6x8xf32>
    %cst_25 = arith.constant dense<0.000000e+00> : vector<6x6xf32>
    %57 = tpu.matmul %54, %55, %cst_25 {dimension_numbers = #tpu.dot_dimension_numbers<[1], [1], [0], [0], [0, 0, 1, 0], [], []>} : vector<6x8xf32>, vector<6x8xf32>, vector<6x6xf32> -> vector<6x6xf32>
    %cst_26 = arith.constant 0.353553385 : f32
    %58 = vector.broadcast %cst_26 : f32 to vector<6x6xf32>
    %59 = arith.mulf %57, %58 : vector<6x6xf32>
    %60 = vector.broadcast %6 : vector<1x6xf32> to vector<6x6xf32>
    %61 = arith.addf %59, %60 : vector<6x6xf32>
    %cst_27 = arith.constant dense<0xFF800000> : vector<6xf32>
    %62 = vector.multi_reduction <maximumf>, %61, %cst_27 [1] : vector<6x6xf32> to vector<6xf32>
    %63 = vector.shape_cast %62 : vector<6xf32> to vector<6x1xf32>
    %64 = vector.broadcast %63 : vector<6x1xf32> to vector<6x6xf32>
    %65 = arith.subf %61, %64 : vector<6x6xf32>
    %66 = math.exp %65 : vector<6x6xf32>
    %cst_28 = arith.constant dense<0.000000e+00> : vector<6xf32>
    %67 = vector.multi_reduction <add>, %66, %cst_28 [1] : vector<6x6xf32> to vector<6xf32>
    %68 = vector.shape_cast %67 : vector<6xf32> to vector<6x1xf32>
    %69 = tpu.reciprocal %68 {approx = true} : vector<6x1xf32> -> vector<6x1xf32>
    %70 = vector.broadcast %69 : vector<6x1xf32> to vector<6x6xf32>
    %71 = arith.mulf %66, %70 : vector<6x6xf32>
    %cst_29 = arith.constant dense<0.000000e+00> : vector<6x8xf32>
    %72 = tpu.matmul %71, %56, %cst_29 {dimension_numbers = #tpu.dot_dimension_numbers<[1], [0], [0], [1], [0, 0, 1, 1], [], []>} : vector<6x6xf32>, vector<6x8xf32>, vector<6x8xf32> -> vector<6x8xf32>
    %c0_30 = arith.constant 0 : index
    %c16 = arith.constant 16 : index
    %73 = vector.load %arg17[%c0_30, %c16] : memref<6x32xf32, #tpu.memory_space<vmem>>, vector<6x8xf32>
    tpu.vector_store %arg17[%c0_30, %c16], %72 {strides = array<i32>} : memref<6x32xf32, #tpu.memory_space<vmem>>, vector<6x8xf32>,
    %74 = vector.extract_strided_slice %13 {offsets = [0, 24], sizes = [6, 8], strides = [1, 1]} : vector<6x96xf32> to vector<6x8xf32>
    %75 = vector.extract_strided_slice %13 {offsets = [0, 56], sizes = [6, 8], strides = [1, 1]} : vector<6x96xf32> to vector<6x8xf32>
    %76 = vector.extract_strided_slice %13 {offsets = [0, 88], sizes = [6, 8], strides = [1, 1]} : vector<6x96xf32> to vector<6x8xf32>
    %cst_31 = arith.constant dense<0.000000e+00> : vector<6x6xf32>
    %77 = tpu.matmul %74, %75, %cst_31 {dimension_numbers = #tpu.dot_dimension_numbers<[1], [1], [0], [0], [0, 0, 1, 0], [], []>} : vector<6x8xf32>, vector<6x8xf32>, vector<6x6xf32> -> vector<6x6xf32>
    %cst_32 = arith.constant 0.353553385 : f32
    %78 = vector.broadcast %cst_32 : f32 to vector<6x6xf32>
    %79 = arith.mulf %77, %78 : vector<6x6xf32>
    %80 = vector.broadcast %6 : vector<1x6xf32> to vector<6x6xf32>
    %81 = arith.addf %79, %80 : vector<6x6xf32>
    %cst_33 = arith.constant dense<0xFF800000> : vector<6xf32>
    %82 = vector.multi_reduction <maximumf>, %81, %cst_33 [1] : vector<6x6xf32> to vector<6xf32>
    %83 = vector.shape_cast %82 : vector<6xf32> to vector<6x1xf32>
    %84 = vector.broadcast %83 : vector<6x1xf32> to vector<6x6xf32>
    %85 = arith.subf %81, %84 : vector<6x6xf32>
    %86 = math.exp %85 : vector<6x6xf32>
    %cst_34 = arith.constant dense<0.000000e+00> : vector<6xf32>
    %87 = vector.multi_reduction <add>, %86, %cst_34 [1] : vector<6x6xf32> to vector<6xf32>
    %88 = vector.shape_cast %87 : vector<6xf32> to vector<6x1xf32>
    %89 = tpu.reciprocal %88 {approx = true} : vector<6x1xf32> -> vector<6x1xf32>
    %90 = vector.broadcast %89 : vector<6x1xf32> to vector<6x6xf32>
    %91 = arith.mulf %86, %90 : vector<6x6xf32>
    %cst_35 = arith.constant dense<0.000000e+00> : vector<6x8xf32>
    %92 = tpu.matmul %91, %76, %cst_35 {dimension_numbers = #tpu.dot_dimension_numbers<[1], [0], [0], [1], [0, 0, 1, 1], [], []>} : vector<6x6xf32>, vector<6x8xf32>, vector<6x8xf32> -> vector<6x8xf32>
    %c0_36 = arith.constant 0 : index
    %c24 = arith.constant 24 : index
    %93 = vector.load %arg17[%c0_36, %c24] : memref<6x32xf32, #tpu.memory_space<vmem>>, vector<6x8xf32>
    tpu.vector_store %arg17[%c0_36, %c24], %92 {strides = array<i32>} : memref<6x32xf32, #tpu.memory_space<vmem>>, vector<6x8xf32>,
    %c0_37 = arith.constant 0 : index
    %c0_38 = arith.constant 0 : index
    %94 = vector.load %arg17[%c0_37, %c0_38] : memref<6x32xf32, #tpu.memory_space<vmem>>, vector<6x32xf32>
    %c0_39 = arith.constant 0 : index
    %c0_40 = arith.constant 0 : index
    %c0_41 = arith.constant 0 : index
    %95 = vector.load %arg6[%c0_39, %c0_40, %c0_41] : memref<1x32x32xf32, #tpu.memory_space<vmem>>, vector<1x32x32xf32>
    %96 = vector.shape_cast %95 : vector<1x32x32xf32> to vector<32x32xf32>
    %cst_42 = arith.constant dense<0.000000e+00> : vector<6x32xf32>
    %97 = tpu.matmul %94, %96, %cst_42 {dimension_numbers = #tpu.dot_dimension_numbers<[1], [0], [0], [1], [0, 0, 1, 1], [], []>} : vector<6x32xf32>, vector<32x32xf32>, vector<6x32xf32> -> vector<6x32xf32>
    %c0_43 = arith.constant 0 : index
    %c0_44 = arith.constant 0 : index
    %c0_45 = arith.constant 0 : index
    %98 = vector.load %arg7[%c0_43, %c0_44, %c0_45] : memref<1x1x32xf32, #tpu.memory_space<vmem>>, vector<1x1x32xf32>
    %99 = vector.shape_cast %98 : vector<1x1x32xf32> to vector<1x32xf32>
    %100 = vector.broadcast %99 : vector<1x32xf32> to vector<6x32xf32>
    %101 = arith.addf %97, %100 : vector<6x32xf32>
    %102 = arith.addf %4, %101 : vector<6x32xf32>
    %c0_46 = arith.constant 0 : index
    %c0_47 = arith.constant 0 : index
    %c0_48 = arith.constant 0 : index
    %103 = vector.load %arg8[%c0_46, %c0_47, %c0_48] : memref<1x1x32xf32, #tpu.memory_space<vmem>>, vector<1x1x32xf32>
    %104 = vector.shape_cast %103 : vector<1x1x32xf32> to vector<1x32xf32>
    %c0_49 = arith.constant 0 : index
    %c0_50 = arith.constant 0 : index
    %c0_51 = arith.constant 0 : index
    %105 = vector.load %arg9[%c0_49, %c0_50, %c0_51] : memref<1x1x32xf32, #tpu.memory_space<vmem>>, vector<1x1x32xf32>
    %106 = vector.shape_cast %105 : vector<1x1x32xf32> to vector<1x32xf32>
    %cst_52 = arith.constant dense<0.000000e+00> : vector<6xf32>
    %107 = vector.multi_reduction <add>, %102, %cst_52 [1] : vector<6x32xf32> to vector<6xf32>
    %108 = vector.shape_cast %107 : vector<6xf32> to vector<6x1xf32>
    %cst_53 = arith.constant 3.200000e+01 : f32
    %109 = vector.broadcast %cst_53 : f32 to vector<6x1xf32>
    %110 = arith.divf %108, %109 : vector<6x1xf32>
    %111 = vector.broadcast %110 : vector<6x1xf32> to vector<6x32xf32>
    %112 = arith.subf %102, %111 : vector<6x32xf32>
    %113 = arith.mulf %112, %112 : vector<6x32xf32>
    %cst_54 = arith.constant dense<0.000000e+00> : vector<6xf32>
    %114 = vector.multi_reduction <add>, %113, %cst_54 [1] : vector<6x32xf32> to vector<6xf32>
    %115 = vector.shape_cast %114 : vector<6xf32> to vector<6x1xf32>
    %cst_55 = arith.constant 3.200000e+01 : f32
    %116 = vector.broadcast %cst_55 : f32 to vector<6x1xf32>
    %117 = arith.divf %115, %116 : vector<6x1xf32>
    %118 = vector.broadcast %110 : vector<6x1xf32> to vector<6x32xf32>
    %119 = arith.subf %102, %118 : vector<6x32xf32>
    %cst_56 = arith.constant 9.99999996E-13 : f32
    %120 = vector.broadcast %cst_56 : f32 to vector<6x1xf32>
    %121 = arith.addf %117, %120 : vector<6x1xf32>
    %122 = math.rsqrt %121 : vector<6x1xf32>
    %123 = vector.broadcast %122 : vector<6x1xf32> to vector<6x32xf32>
    %124 = arith.mulf %119, %123 : vector<6x32xf32>
    %125 = vector.broadcast %104 : vector<1x32xf32> to vector<6x32xf32>
    %126 = arith.mulf %124, %125 : vector<6x32xf32>
    %127 = vector.broadcast %106 : vector<1x32xf32> to vector<6x32xf32>
    %128 = arith.addf %126, %127 : vector<6x32xf32>
    %c0_57 = arith.constant 0 : index
    %c0_58 = arith.constant 0 : index
    %c0_59 = arith.constant 0 : index
    %129 = vector.load %arg10[%c0_57, %c0_58, %c0_59] : memref<1x32x64xf32, #tpu.memory_space<vmem>>, vector<1x32x64xf32>
    %130 = vector.shape_cast %129 : vector<1x32x64xf32> to vector<32x64xf32>
    %cst_60 = arith.constant dense<0.000000e+00> : vector<6x64xf32>
    %131 = tpu.matmul %128, %130, %cst_60 {dimension_numbers = #tpu.dot_dimension_numbers<[1], [0], [0], [1], [0, 0, 1, 1], [], []>} : vector<6x32xf32>, vector<32x64xf32>, vector<6x64xf32> -> vector<6x64xf32>
    %c0_61 = arith.constant 0 : index
    %c0_62 = arith.constant 0 : index
    %c0_63 = arith.constant 0 : index
    %132 = vector.load %arg11[%c0_61, %c0_62, %c0_63] : memref<1x1x64xf32, #tpu.memory_space<vmem>>, vector<1x1x64xf32>
    %133 = vector.shape_cast %132 : vector<1x1x64xf32> to vector<1x64xf32>
    %134 = vector.broadcast %133 : vector<1x64xf32> to vector<6x64xf32>
    %135 = arith.addf %131, %134 : vector<6x64xf32>
    %cst_64 = arith.constant 5.000000e-01 : f32
    %136 = vector.broadcast %cst_64 : f32 to vector<6x64xf32>
    %137 = arith.mulf %136, %135 : vector<6x64xf32>
    %cst_65 = arith.constant 4.471500e-02 : f32
    %138 = vector.broadcast %cst_65 : f32 to vector<6x64xf32>
    %139 = arith.mulf %138, %135 : vector<6x64xf32>
    %140 = arith.mulf %139, %135 : vector<6x64xf32>
    %141 = arith.mulf %140, %135 : vector<6x64xf32>
    %142 = arith.addf %135, %141 : vector<6x64xf32>
    %cst_66 = arith.constant 0.797884583 : f32
    %143 = vector.broadcast %cst_66 : f32 to vector<6x64xf32>
    %144 = arith.mulf %143, %142 : vector<6x64xf32>
    %145 = math.tanh %144 : vector<6x64xf32>
    %cst_67 = arith.constant 1.000000e+00 : f32
    %146 = vector.broadcast %cst_67 : f32 to vector<6x64xf32>
    %147 = arith.addf %146, %145 : vector<6x64xf32>
    %148 = arith.mulf %137, %147 : vector<6x64xf32>
    %c0_68 = arith.constant 0 : index
    %c0_69 = arith.constant 0 : index
    %c0_70 = arith.constant 0 : index
    %149 = vector.load %arg12[%c0_68, %c0_69, %c0_70] : memref<1x64x32xf32, #tpu.memory_space<vmem>>, vector<1x64x32xf32>
    %150 = vector.shape_cast %149 : vector<1x64x32xf32> to vector<64x32xf32>
    %cst_71 = arith.constant dense<0.000000e+00> : vector<6x32xf32>
    %151 = tpu.matmul %148, %150, %cst_71 {dimension_numbers = #tpu.dot_dimension_numbers<[1], [0], [0], [1], [0, 0, 1, 1], [], []>} : vector<6x64xf32>, vector<64x32xf32>, vector<6x32xf32> -> vector<6x32xf32>
    %152 = arith.addf %128, %151 : vector<6x32xf32>
    %c0_72 = arith.constant 0 : index
    %c0_73 = arith.constant 0 : index
    %c0_74 = arith.constant 0 : index
    %153 = vector.load %arg13[%c0_72, %c0_73, %c0_74] : memref<1x1x32xf32, #tpu.memory_space<vmem>>, vector<1x1x32xf32>
    %154 = vector.shape_cast %153 : vector<1x1x32xf32> to vector<1x32xf32>
    %155 = vector.broadcast %154 : vector<1x32xf32> to vector<6x32xf32>
    %156 = arith.addf %152, %155 : vector<6x32xf32>
    %c0_75 = arith.constant 0 : index
    %c0_76 = arith.constant 0 : index
    %c0_77 = arith.constant 0 : index
    %157 = vector.load %arg14[%c0_75, %c0_76, %c0_77] : memref<1x1x32xf32, #tpu.memory_space<vmem>>, vector<1x1x32xf32>
    %158 = vector.shape_cast %157 : vector<1x1x32xf32> to vector<1x32xf32>
    %c0_78 = arith.constant 0 : index
    %c0_79 = arith.constant 0 : index
    %c0_80 = arith.constant 0 : index
    %159 = vector.load %arg15[%c0_78, %c0_79, %c0_80] : memref<1x1x32xf32, #tpu.memory_space<vmem>>, vector<1x1x32xf32>
    %160 = vector.shape_cast %159 : vector<1x1x32xf32> to vector<1x32xf32>
    %cst_81 = arith.constant dense<0.000000e+00> : vector<6xf32>
    %161 = vector.multi_reduction <add>, %156, %cst_81 [1] : vector<6x32xf32> to vector<6xf32>
    %162 = vector.shape_cast %161 : vector<6xf32> to vector<6x1xf32>
    %cst_82 = arith.constant 3.200000e+01 : f32
    %163 = vector.broadcast %cst_82 : f32 to vector<6x1xf32>
    %164 = arith.divf %162, %163 : vector<6x1xf32>
    %165 = vector.broadcast %164 : vector<6x1xf32> to vector<6x32xf32>
    %166 = arith.subf %156, %165 : vector<6x32xf32>
    %167 = arith.mulf %166, %166 : vector<6x32xf32>
    %cst_83 = arith.constant dense<0.000000e+00> : vector<6xf32>
    %168 = vector.multi_reduction <add>, %167, %cst_83 [1] : vector<6x32xf32> to vector<6xf32>
    %169 = vector.shape_cast %168 : vector<6xf32> to vector<6x1xf32>
    %cst_84 = arith.constant 3.200000e+01 : f32
    %170 = vector.broadcast %cst_84 : f32 to vector<6x1xf32>
    %171 = arith.divf %169, %170 : vector<6x1xf32>
    %172 = vector.broadcast %164 : vector<6x1xf32> to vector<6x32xf32>
    %173 = arith.subf %156, %172 : vector<6x32xf32>
    %cst_85 = arith.constant 9.99999996E-13 : f32
    %174 = vector.broadcast %cst_85 : f32 to vector<6x1xf32>
    %175 = arith.addf %171, %174 : vector<6x1xf32>
    %176 = math.rsqrt %175 : vector<6x1xf32>
    %177 = vector.broadcast %176 : vector<6x1xf32> to vector<6x32xf32>
    %178 = arith.mulf %173, %177 : vector<6x32xf32>
    %179 = vector.broadcast %158 : vector<1x32xf32> to vector<6x32xf32>
    %180 = arith.mulf %178, %179 : vector<6x32xf32>
    %181 = vector.broadcast %160 : vector<1x32xf32> to vector<6x32xf32>
    %182 = arith.addf %180, %181 : vector<6x32xf32>
    %c0_86 = arith.constant 0 : index
    %c0_87 = arith.constant 0 : index
    %c0_88 = arith.constant 0 : index
    %183 = vector.load %arg16[%c0_86, %c0_87, %c0_88] : memref<1x6x32xf32, #tpu.memory_space<vmem>>, vector<1x6x32xf32>
    %184 = vector.shape_cast %183 : vector<1x6x32xf32> to vector<6x32xf32>
    %185 = vector.shape_cast %182 : vector<6x32xf32> to vector<1x6x32xf32>
    tpu.vector_store %arg16[%c0_86, %c0_87, %c0_88], %185 {strides = array<i32>} : memref<1x6x32xf32, #tpu.memory_space<vmem>>, vector<1x6x32xf32>,
    return
  }
  func.func @transform_0(%arg0: i32, %arg1: i32) -> (i32, i32, i32) {
    %c0_i32 = arith.constant 0 : i32
    %c0_i32_0 = arith.constant 0 : i32
    %c0_i32_1 = arith.constant 0 : i32
    return %arg0, %c0_i32, %c0_i32_0 : i32, i32, i32
  }
  func.func @transform_1(%arg0: i32, %arg1: i32) -> (i32, i32, i32) {
    %c0_i32 = arith.constant 0 : i32
    %c0_i32_0 = arith.constant 0 : i32
    %c0_i32_1 = arith.constant 0 : i32
    return %arg0, %c0_i32, %c0_i32_0 : i32, i32, i32
  }
  func.func @transform_2(%arg0: i32, %arg1: i32) -> (i32, i32, i32) {
    %c0_i32 = arith.constant 0 : i32
    %c0_i32_0 = arith.constant 0 : i32
    %c0_i32_1 = arith.constant 0 : i32
    return %arg1, %c0_i32, %c0_i32_0 : i32, i32, i32
  }
  func.func @transform_3(%arg0: i32, %arg1: i32) -> (i32, i32, i32) {
    %c0_i32 = arith.constant 0 : i32
    %c0_i32_0 = arith.constant 0 : i32
    %c0_i32_1 = arith.constant 0 : i32
    return %arg1, %c0_i32, %c0_i32_0 : i32, i32, i32
  }
  func.func @transform_4(%arg0: i32, %arg1: i32) -> (i32, i32, i32) {
    %c0_i32 = arith.constant 0 : i32
    %c0_i32_0 = arith.constant 0 : i32
    %c0_i32_1 = arith.constant 0 : i32
    return %arg1, %c0_i32, %c0_i32_0 : i32, i32, i32
  }
  func.func @transform_5(%arg0: i32, %arg1: i32) -> (i32, i32, i32) {
    %c0_i32 = arith.constant 0 : i32
    %c0_i32_0 = arith.constant 0 : i32
    %c0_i32_1 = arith.constant 0 : i32
    return %arg1, %c0_i32, %c0_i32_0 : i32, i32, i32
  }
  func.func @transform_6(%arg0: i32, %arg1: i32) -> (i32, i32, i32) {
    %c0_i32 = arith.constant 0 : i32
    %c0_i32_0 = arith.constant 0 : i32
    %c0_i32_1 = arith.constant 0 : i32
    return %arg1, %c0_i32, %c0_i32_0 : i32, i32, i32
  }
  func.func @transform_7(%arg0: i32, %arg1: i32) -> (i32, i32, i32) {
    %c0_i32 = arith.constant 0 : i32
    %c0_i32_0 = arith.constant 0 : i32
    %c0_i32_1 = arith.constant 0 : i32
    return %arg1, %c0_i32, %c0_i32_0 : i32, i32, i32
  }
  func.func @transform_8(%arg0: i32, %arg1: i32) -> (i32, i32, i32) {
    %c0_i32 = arith.constant 0 : i32
    %c0_i32_0 = arith.constant 0 : i32
    %c0_i32_1 = arith.constant 0 : i32
    return %arg1, %c0_i32, %c0_i32_0 : i32, i32, i32
  }
  func.func @transform_9(%arg0: i32, %arg1: i32) -> (i32, i32, i32) {
    %c0_i32 = arith.constant 0 : i32
    %c0_i32_0 = arith.constant 0 : i32
    %c0_i32_1 = arith.constant 0 : i32
    return %arg1, %c0_i32, %c0_i32_0 : i32, i32, i32
  }
  func.func @transform_10(%arg0: i32, %arg1: i32) -> (i32, i32, i32) {
    %c0_i32 = arith.constant 0 : i32
    %c0_i32_0 = arith.constant 0 : i32
    %c0_i32_1 = arith.constant 0 : i32
    return %arg1, %c0_i32, %c0_i32_0 : i32, i32, i32
  }
  func.func @transform_11(%arg0: i32, %arg1: i32) -> (i32, i32, i32) {
    %c0_i32 = arith.constant 0 : i32
    %c0_i32_0 = arith.constant 0 : i32
    %c0_i32_1 = arith.constant 0 : i32
    return %arg1, %c0_i32, %c0_i32_0 : i32, i32, i32
  }
  func.func @transform_12(%arg0: i32, %arg1: i32) -> (i32, i32, i32) {
    %c0_i32 = arith.constant 0 : i32
    %c0_i32_0 = arith.constant 0 : i32
    %c0_i32_1 = arith.constant 0 : i32
    return %arg1, %c0_i32, %c0_i32_0 : i32, i32, i32
  }
  func.func @transform_13(%arg0: i32, %arg1: i32) -> (i32, i32, i32) {
    %c0_i32 = arith.constant 0 : i32
    %c0_i32_0 = arith.constant 0 : i32
    %c0_i32_1 = arith.constant 0 : i32
    return %arg1, %c0_i32, %c0_i32_0 : i32, i32, i32
  }
  func.func @transform_14(%arg0: i32, %arg1: i32) -> (i32, i32, i32) {
    %c0_i32 = arith.constant 0 : i32
    %c0_i32_0 = arith.constant 0 : i32
    %c0_i32_1 = arith.constant 0 : i32
    return %arg0, %c0_i32, %c0_i32_0 : i32, i32, i32
  }
}

</mosaic_0001>

<bundles_post_ra>
// kernel: _encode_labels_jit.1
= control target key start
LH: loop header
LB: loop body
LE: loop exit
PB: predicated region body
PF: predicated region fallthrough
CT: control target
= control target key end

     0   :  { %s2424_s29 = smov 0   ;;  %s2426_s30 = smov 0   ;;  %s2699_s0 = inlined_call_operand.vmem [shape: f32[16,6,32], index: 0, kind: input, shape index: {}]   ;;  %s2700_s1 = inlined_call_operand.vmem [shape: f32[16,1,6], index: 1, kind: input, shape index: {}]   ;;  %s2701_s2 = inlined_call_operand.vmem [shape: f32[2,32,96], index: 2, kind: input, shape index: {}]   ;;  %s2702_s3 = inlined_call_operand.vmem [shape: f32[2,1,96], index: 3, kind: input, shape index: {}]   ;;  %s2703_s4 = inlined_call_operand.vmem [shape: f32[2,32,32], index: 4, kind: input, shape index: {}]   ;;  %s2704_s5 = inlined_call_operand.vmem [shape: f32[2,1,32], index: 5, kind: input, shape index: {}]   ;;  %s2705_s6 = inlined_call_operand.vmem [shape: f32[2,1,32], index: 6, kind: input, shape index: {}]   ;;  %s2706_s7 = inlined_call_operand.vmem [shape: f32[2,1,32], index: 7, kind: input, shape index: {}]   ;;  %s2707_s8 = inlined_call_operand.vmem [shape: f32[2,32,64], index: 8, kind: input, shape index: {}]   ;;  %s2708_s9 = inlined_call_operand.vmem [shape: f32[2,1,64], index: 9, kind: input, shape index: {}]   ;;  %s2709_s10 = inlined_call_operand.vmem [shape: f32[2,64,32], index: 10, kind: input, shape index: {}]   ;;  %s2710_s11 = inlined_call_operand.vmem [shape: f32[2,1,32], index: 11, kind: input, shape index: {}]   ;;  %s2711_s12 = inlined_call_operand.vmem [shape: f32[2,1,32], index: 12, kind: input, shape index: {}]   ;;  %s2712_s13 = inlined_call_operand.vmem [shape: f32[2,1,32], index: 13, kind: input, shape index: {}]   ;;  %s2713_s14 = inlined_call_operand.vmem [shape: f32[16,6,32], index: 14, kind: output, shape index: {}]  }
   0x1   :  { %2718 = sst [smem:[#allocation9_spill]] %s2699_s0  ;;  %s2428_s15 = smov 0  }
   0x2   :  { %2719 = sst [smem:[#allocation10_spill]] %s2700_s1  ;;  %s2430_s16 = smov 0  }
   0x3   :  { %2720 = sst [smem:[#allocation11_spill]] %s2701_s2  ;;  %s2432_s17 = smov 0  }
   0x4   :  { %2721 = sst [smem:[#allocation12_spill]] %s2703_s4 }
   0x5   :  { %2722 = sst [smem:[#allocation13_spill]] %s2706_s7 }
   0x6   :  { %2723 = sst [smem:[#allocation14_spill]] %s2707_s8 }
   0x7   :  { %2724 = sst [smem:[#allocation15_spill]] %s2708_s9 }
   0x8   :  { %2725 = sst [smem:[#allocation16_spill]] %s2711_s12 }
   0x9   :  { %2726 = sst [smem:[#allocation17_spill]] %s2712_s13 }
   0xa   :  { %2727 = sst [smem:[#allocation18_spill]] %s2713_s14 }
   0xb LB: > { %2728 = sst [smem:[#allocation3_spill]] %s2314_s29  ;;  %s33_s18 = sadd.s32 1, %s2322_s15  ;;  %s2330_s17 = sphi %s2432_s17, %s24_s17   ;;  %s2326_s16 = sphi %s2430_s16, %s2760_s16   ;;  %s2322_s15 = sphi %s2428_s15, %s2759_s15   ;;  %s2318_s30 = sphi %s2426_s30, %s2758_s30   ;;  %s2314_s29 = sphi %s2424_s29, %s2757_s29  }
   0xc   : > { %2729 = sst [smem:[#allocation4_spill]] %s2322_s15  ;;  %s36_s19 = sadd.s32 1, %s2326_s16 }
   0xd   : > { %2730 = sst [smem:[#allocation5_spill]] %s2326_s16  ;;  %p34_p0 = scmp.ge.s32.totalorder %s33_s18, 2 }
   0xe   : > { %2731 = sst [smem:[#allocation6_spill]] %s2330_s17  ;;  %p2004_p1 = scmp.ge.s32.totalorder %s2330_s17, 1 }
   0xf   : > { %p535_p2 = scmp.lt.s32.totalorder %s2330_s17, 33  ;;  %s2762_s18 = smov (%p34_p0, %s33_s18), 0 }
  0x10   : > { %2732 = sst [smem:[#allocation7_spill]] %s2762_s18  ;;  %s2764_s19 = smov (!%p34_p0, %s36_s19), %s2326_s16 }
  0x11   : > { %p536_p3 = pnand %p2004_p1, %p535_p2  ;;  %p38_p4 = scmp.ge.s32.totalorder %s2764_s19, 16 }
  0x12   : > { %p626_p5 = scmp.lt.s32.totalorder (!%p536_p3), %s2318_s30, 15  ;;  %p633_p6 = scmp.lt.s32.totalorder (!%p536_p3), %s2314_s29, 1 }
  0x13   : > { %s2766_s19 = smov (%p38_p4, %s2764_s19), 0  ;;  %539 = sbr.rel (%p536_p3) target bundleno = 2605 (0xa2d), region = 76 }
  0x14   : > { %2733 = sst [smem:[#allocation8_spill]] %s2766_s19  ;;  %s2735_s0 = sld [smem:[#allocation9_spill]] (!%p536_p3) }
  0x15   : > { %s2736_s2 = sld [smem:[#allocation11_spill]] (!%p536_p3)  ;;  %s2737_s4 = sld [smem:[#allocation12_spill]] (!%p536_p3) }
  0x16   : > { %s2739_s8 = sld [smem:[#allocation14_spill]] (!%p536_p3)  ;;  %s2741_s19 = sld [smem:[#allocation16_spill]] (!%p536_p3) }
  0x17   : > { %s2744_s22 = sld [smem:[#allocation3_spill]] (!%p536_p3) }
  0x1a   : > { %s2768_s30 = smov (!%p626_p5, %s2318_s30), 15 }
  0x1b   : > { %s2460_s20 = scalar_select %p633_p6, %s2314_s29, 1 }
  0x1c   : > { %s2005_s21 = sshll.u32 %s2768_s30, 3  ;;  %s2743_s29 = sld [smem:[#allocation18_spill]] }
  0x1d   : > { %s629_s27 = scalar_lea.vmem %s2735_s0, %s2005_s21  ;;  %s2047_s28 = sshll.u32 %s2460_s20, 5 }
  0x1e   : > { %s637_s16 = scalar_lea.vmem %s2736_s2, %s2047_s28  ;;  %s2481_s12 = scalar_lea.vmem %s2737_s4, %s2047_s28 }
  0x1f   : > { %s2498_s17 = scalar_lea.vmem %s2739_s8, %s2047_s28  ;;  %s2050_s4 = sshll.u32 %s2460_s20, 6 }
  0x20   : > { %s670_s24 = scalar_lea.vmem %s2710_s11, %s2460_s20  ;;  %s2512_s0 = scalar_lea.vmem %s2709_s10, %s2050_s4 }
  0x21   : > { %s673_s2 = scalar_lea.vmem %s2741_s19, %s2460_s20  ;;  %s2742_s8 = sld [smem:[#allocation17_spill]] }
  0x22   : > { %s2525_s9 = scalar_lea.vmem %s2743_s29, %s2005_s21  ;;  %p2015_p7 = scmp.ne.s32.totalorder %s2744_s22, 0 }
  0x23   : > { %v685_v0 = vld [vmem:[%s629_s27] sm:$0x3f] (!%p2015_p7)  ;;  %vm686_vm0 = vcmask (!%p2015_p7), 259072  }
  0x24   : > { %684 = sbr.rel (%p2015_p7) target bundleno = 43 (0x2b), region = 80  ;;  %687 = vst.msk [vmem:[%s2525_s9] sm:$0x3f] (!%p2015_p7), %vm686_vm0, %v685_v0 }
  0x27   : > { %s676_s7 = scalar_lea.vmem %s2742_s8, %s2460_s20 }
  0x2b PF: > { %v690_v1 = vld [vmem:[%s637_s16] sm:$0xff]  ;;  %v691_v2 = vld [vmem:[%s637_s16 + $0x8] sm:$0xff]  ;;  %v692_v3 = vld [vmem:[%s637_s16 + $0x10] sm:$0xff]  ;;  %v2332_v4 = vmov 0.0|0.0   ;;  %vm2333_vm1 = vmmov 0   ;;  %v2334_v7 = vmov 0.0   ;;  %s2745_s29 = scalar_lea.vmem %s2702_s3, %s2460_s20 }
  0x2c   : > { %2183 = vmatprep.subr.bf16.mxu1 %v2332_v4  ;;  %v2184_v5 = vpack.c.bf16 %v691_v2, %v690_v1  ;;  %v693_v6 = vld [vmem:[%s637_s16 + $0x18] sm:$0xff]  ;;  %2099 = vmatprep.mubr.msk.f32.mxu1 %vm2333_vm1, %v2334_v7  ;;  %v2537_v9 = vld [vmem:[%s2525_s9] sm:$0x3f]  ;;  %vm701_vm2 = vcmask 261120   ;;  %s2335_s16 = smov 120   ;;  %s2336_s21 = smov 96  }
  0x2d   : > { %2112 = vmatprep.subr.mxu0 %v2334_v7  ;;  %2114 = vmatprep.mubr.msk.f32.mxu0 %vm2333_vm1, %v2334_v7  ;;  %v2187_v8 = vpack.c.bf16 %v693_v6, %v692_v3  ;;  %v2016_v10 = vld [vmem:[%s2745_s29] ss:$0 sm:$0xff]  ;;  %s2337_s27 = smov 80   ;;  %s2338_s19 = smov 88   ;;  %vm778_vm3 = vcmask 64512   ;;  %vm861_vm4 = vcmask 46080  }
  0x2e   : > { %2185 = vmatpush3.bf16.msra.mxu1 %v2184_v5  ;;  %s2339_s23 = smov 72   ;;  %s2340_s25 = smov 112   ;;  %vm879_vm5 = vcmask 1045504   ;;  %vm875_vm6 = vcmask 48128   ;;  %vm952_vm7 = vcmask 62464   ;;  %vm1126_vm8 = vcmask 128064  }
  0x2f   : > { %2186 = vmatprep.subr.bf16.mxu1 %v2332_v4  ;;  %s2341_s26 = smov 104   ;;  %s2746_s28 = sld [smem:[#allocation10_spill]]  ;;  %vm1300_vm9 = vcmask 193664   ;;  %vm1474_vm10 = vcmask 259264   ;;  %vm1564_vm11 = vcmask 259072   ;;  %vm1694_vm12 = vcmask 523264  }
  0x30   : > { %s2343_s13 = smov 64   ;;  %s2344_s14 = smov 48  }
  0x31   : > { %s2345_s22 = smov 40   ;;  %s2346_s4 = smov 8  }
  0x32   : > { %2188 = vmatpush3.bf16.msra.mxu1 %v2187_v8  ;;  %s2347_s8 = smov 16   ;;  %s2348_s29 = smov 24  }
  0x33   : > { %2102 = vmatprep.subr.mxu1 %v2334_v7 }
  0x35   : > { %2100 = vmatmul.mubr.msk.f32.vlgmr.msra.gmra.mrb[0].mxu1 %vm701_vm2, %v2537_v9  ;;  %s2747_s15 = scalar_lea.vmem %s2746_s28, %s2768_s30  ;;  %s2342_s30 = smov 56  }
  0x36   : > { %2104 = vmatprep.mubr.msk.f32.mxu1 %vm2333_vm1, %v2334_v7  ;;  %v2020_v22 = vld [vmem:[%s2747_s15] ss:$0 sm:$0xff]  ;;  %s2752_s15 = sld [smem:[#allocation15_spill]] }
 0x108   : > { %v771_v11 = vpop.f32.mrb[0].mxu1 }
 0x109   : > { %v2549_v12 = vadd.f32 %v2016_v10, %v771_v11  ;;  %v2101_v13 = vpop.f32.mrb[1].mxu1 }
 0x10b   : > { %954 = vrot.lane.b32.xlu1 %v2549_v12, %s2335_s16  ;;  %776 = vrot.lane.b32.xlu0 %v2549_v12, %s2336_s21  ;;  %s2748_s21 = scalar_lea.vmem %s2704_s5, %s2460_s20 }
 0x10f   : > { %1130 = vrot.lane.b32.xlu1 %v2549_v12, %s2337_s27  ;;  %956 = vrot.lane.b32.xlu0 %v2549_v12, %s2338_s19 }
 0x113   : > { %1304 = vrot.lane.b32.xlu1 %v2549_v12, %s2339_s23  ;;  %1128 = vrot.lane.b32.xlu0 %v2549_v12, %s2340_s25  ;;  %s2749_s23 = scalar_lea.vmem %s2705_s6, %s2460_s20 }
 0x117   : > { %1302 = vrot.lane.b32.xlu0 %v2549_v12, %s2341_s26 }
 0x17d   : > { %v955_v14 = vpop.permute.xlu1 %954  ;;  %v777_v15 = vpop.permute.xlu0 %776 }
 0x17e   : > { %2103 = vmatpush3.xpose.msk.msra.mxu1 %vm778_vm3, %v777_v15 }
 0x17f   : > { %2107 = vmatprep.subr.mxu1 %v2334_v7 }
 0x181   : > { %2105 = vmatmul.mubr.msk.f32.vlgmr.msra.gmra.mrb[2].mxu1 %vm778_vm3, %v2549_v12  ;;  %v957_v16 = vpop.permute.xlu0 %956  ;;  %v1131_v17 = vpop.permute.xlu1 %1130 }
 0x182   : > { %2113 = vmatpush3.xpose.msk.msra.mxu0 %vm778_vm3, %v957_v16  ;;  %2109 = vmatprep.mubr.msk.f32.mxu1 %vm2333_vm1, %v2334_v7 }
 0x183   : > { %2122 = vmatprep.subr.mxu0 %v2334_v7 }
 0x185   : > { %2115 = vmatmul.mubr.msk.f32.vlgmr.msra.gmra.mrb[0].mxu0 %vm778_vm3, %v955_v14  ;;  %v1129_v18 = vpop.permute.xlu0 %1128  ;;  %v1305_v19 = vpop.permute.xlu1 %1304 }
 0x186   : > { %2123 = vmatpush3.xpose.msk.msra.mxu0 %vm778_vm3, %v1131_v17  ;;  %2124 = vmatprep.mubr.msk.f32.mxu0 %vm2333_vm1, %v2334_v7 }
 0x187   : > { %2132 = vmatprep.subr.mxu0 %v2334_v7 }
 0x189   : > { %2125 = vmatmul.mubr.msk.f32.vlgmr.msra.gmra.mrb[2].mxu0 %vm778_vm3, %v1129_v18  ;;  %v1303_v20 = vpop.permute.xlu0 %1302 }
 0x18a   : > { %2133 = vmatpush3.xpose.msk.msra.mxu0 %vm778_vm3, %v1305_v19  ;;  %2134 = vmatprep.mubr.msk.f32.mxu0 %vm2333_vm1, %v2334_v7 }
 0x18b   : > { %2189 = vmatprep.subr.bf16.mxu0 %v2332_v4 }
 0x18d   : > { %2135 = vmatmul.mubr.msk.f32.vlgmr.msra.gmra.mrb[4].mxu0 %vm778_vm3, %v1303_v20 }
 0x18e   : > { %2150 = vmatprep.mubr.msk.f32.mxu0 %vm2333_vm1, %v2334_v7 }
 0x254   : > { %v849_v21 = vpop.f32.mrb[2].mxu1 }
 0x255   : > { %v853_v23 = vmul.f32 0.35355338, %v849_v21  ;;  %v2106_v24 = vpop.f32.mrb[3].mxu1  ;;  %v1477_v21 = vld [vmem:[%s2481_s12] sm:$0xff] }
 0x256   : > { %v1479_v24 = vld [vmem:[%s2481_s12 + $0x10] sm:$0xff] }
 0x257   : > { %v860_v25 = vadd.f32 %v2020_v22, %v853_v23 }
 0x258   : > { %v1028_v26 = vpop.f32.mrb[0].mxu0 }
 0x259   : > { %v1032_v27 = vmul.f32 0.35355338, %v1028_v26  ;;  %v2116_v28 = vpop.f32.mrb[1].mxu0  ;;  %v862_v29 = vsel %vm861_vm4, %v860_v25, -inf }
 0x25a   : > { %863 = vmax.xlane.f32.xlu1 %v862_v29 }
 0x25b   : > { %v1033_v30 = vadd.f32 %v2020_v22, %v1032_v27 }
 0x25c   : > { %v1202_v31 = vpop.f32.mrb[2].mxu0 }
 0x25d   : > { %v1206_v32 = vmul.f32 0.35355338, %v1202_v31  ;;  %v2126_v33 = vpop.f32.mrb[3].mxu0  ;;  %v1034_v34 = vsel %vm861_vm4, %v1033_v30, -inf }
 0x25e   : > { %1035 = vmax.xlane.f32.xlu0 %v1034_v34 }
 0x25f   : > { %v1207_v35 = vadd.f32 %v2020_v22, %v1206_v32 }
 0x260   : > { %v1376_v36 = vpop.f32.mrb[4].mxu0 }
 0x261   : > { %v1380_v37 = vmul.f32 0.35355338, %v1376_v36  ;;  %v2136_v38 = vpop.f32.mrb[5].mxu0  ;;  %v1208_v39 = vsel %vm861_vm4, %v1207_v35, -inf }
 0x262   : > { %1209 = vmax.xlane.f32.xlu0 %v1208_v39 }
 0x263   : > { %v1381_v40 = vadd.f32 %v2020_v22, %v1380_v37  ;;  %v1478_v22 = vld [vmem:[%s2481_s12 + $0x8] sm:$0xff] }
 0x264   : > { %v2190_v23 = vpack.c.bf16 %v1478_v22, %v1477_v21 }
 0x265   : > { %v1382_v41 = vsel %vm861_vm4, %v1381_v40, -inf }
 0x266   : > { %1383 = vmax.xlane.f32.xlu1 %v1382_v41  ;;  %2191 = vmatpush3.bf16.msra.mxu0 %v2190_v23  ;;  %v2042_v23 = vld [vmem:[%s670_s24] ss:$0 sm:$0xff] }
 0x267   : > { %2192 = vmatprep.subr.bf16.mxu0 %v2332_v4 }
 0x277   : > { %1045 = vrot.lane.b32.xlu1 %v2549_v12, %s2342_s30  ;;  %s2753_s30 = scalar_lea.vmem %s2752_s15, %s2460_s20 }
 0x2e7   : > { %v864_v42 = vpop.xlane.xlu1 %863 }
 0x2e8   : > { %v865_v43 = vsub.f32 %v860_v25, %v864_v42  ;;  %v1480_v25 = vld [vmem:[%s2481_s12 + $0x18] sm:$0xff] }
 0x2e9   : > { %v2193_v26 = vpack.c.bf16 %v1480_v25, %v1479_v24 }
 0x2ea   : > { %v866_v44 = vmul.f32 1.442695, %v865_v43 }
 0x2eb   : > { %v1036_v45 = vpop.xlane.xlu0 %1035  ;;  %2194 = vmatpush3.bf16.msra.mxu0 %v2193_v26 }
 0x2ec   : > { %2270 = vpow2.f32 %v866_v44  ;;  %v1037_v46 = vsub.f32 %v1033_v30, %v1036_v45  ;;  %2201 = vmatprep.subr.bf16.mxu0 %v2332_v4  ;;  %v1593_v45 = vld [vmem:[%s2498_s17] sm:$0xff] }
 0x2ee   : > { %v1038_v47 = vmul.f32 1.442695, %v1037_v46  ;;  %v1594_v46 = vld [vmem:[%s2498_s17 + $0x8] sm:$0xff] }
 0x2ef   : > { %v1210_v57 = vpop.xlane.xlu0 %1209 }
 0x2f0   : > { %2272 = vpow2.f32 %v1038_v47  ;;  %v1211_v58 = vsub.f32 %v1207_v35, %v1210_v57  ;;  %v2035_v35 = vld [vmem:[%s2748_s21] ss:$0 sm:$0xff]  ;;  %v2196_v47 = vpack.c.bf16 %v1594_v46, %v1593_v45 }
 0x2f2   : > { %v1212_v59 = vmul.f32 1.442695, %v1211_v58 }
 0x2f3   : > { %v1384_v48 = vpop.xlane.xlu1 %1383 }
 0x2f4   : > { %v1385_v49 = vsub.f32 %v1381_v40, %v1384_v48  ;;  %v1596_v48 = vld [vmem:[%s2498_s17 + $0x18] sm:$0xff] }
 0x2f6   : > { %v2271_v50 = vpop.eup %2270  ;;  %v1386_v51 = vmul.f32 1.442695, %v1385_v49 }
 0x2f7   : > { %v868_v52 = vsel %vm861_vm4, %v2271_v50, 0.0  ;;  %v1046_v62 = vpop.permute.xlu1 %1045 }
 0x2f8   : > { %2274 = vpow2.f32 %v1386_v51  ;;  %869 = vadd.xlane.f32.xlu0 %v868_v52 }
 0x2f9   : > { %2276 = vpow2.f32 %v1212_v59  ;;  %v1686_v59 = vld [vmem:[%s2512_s0] sm:$0xff] }
 0x2fa   : > { %v2273_v53 = vpop.eup %2272 }
 0x2fb   : > { %v1040_v54 = vsel %vm861_vm4, %v2273_v53, 0.0 }
 0x2fc   : > { %1041 = vadd.xlane.f32.xlu1 %v1040_v54  ;;  %v2037_v54 = vld [vmem:[%s2749_s23] ss:$0 sm:$0xff] }
 0x302   : > { %v2275_v55 = vpop.eup %2274 }
 0x303   : > { %v1388_v56 = vsel %vm861_vm4, %v2275_v55, 0.0  ;;  %v2277_v60 = vpop.eup %2276 }
 0x304   : > { %1389 = vadd.xlane.f32.xlu1 %v1388_v56  ;;  %v1214_v61 = vsel %vm861_vm4, %v2277_v60, 0.0 }
 0x30e   : > { %873 = vrot.lane.b32.xlu0 %v2549_v12, %s2343_s13 }
 0x315   : > { %1219 = vrot.lane.b32.xlu1 %v2549_v12, %s2344_s14 }
 0x32d   : > { %1215 = vadd.xlane.f32.xlu0 %v1214_v61 }
 0x343   : > { %1393 = vrot.lane.b32.xlu0 %v2549_v12, %s2345_s22 }
 0x385   : > { %v870_v63 = vpop.xlane.xlu0 %869 }
 0x386   : > { %2278 = vrcp.f32 %v870_v63  ;;  %v1689_v63 = vld [vmem:[%s2512_s0 + $0x18] sm:$0xff] }
 0x389   : > { %v874_v0 = vpop.permute.xlu0 %873  ;;  %v1042_v1 = vpop.xlane.xlu1 %1041 }
 0x38a   : > { %2280 = vrcp.f32 %v1042_v1  ;;  %2108 = vmatpush3.msk.msra.mxu1 %vm879_vm5, %v874_v0  ;;  %v1690_v1 = vld [vmem:[%s2512_s0 + $0x20] sm:$0xff] }
 0x38b   : > { %2117 = vmatprep.subr.mxu1 %v2334_v7 }
 0x390   : > { %v2279_v2 = vpop.eup %2278 }
 0x391   : > { %v872_v3 = vmul.f32 %v2279_v2, %v2271_v50  ;;  %v1390_v5 = vpop.xlane.xlu1 %1389  ;;  %v1691_v2 = vld [vmem:[%s2512_s0 + $0x28] sm:$0xff] }
 0x393   : > { %2110 = vmatmul.mubr.msk.f32.vlgmr.msra.gmra.mrb[4].mxu1 %vm875_vm6, %v872_v3  ;;  %v2208_v3 = vpack.c.bf16 %v1691_v2, %v1690_v1 }
 0x394   : > { %v2281_v6 = vpop.eup %2280  ;;  %2118 = vmatpush3.msk.msra.mxu1 %vm879_vm5, %v1046_v62  ;;  %2119 = vmatprep.mubr.msk.f32.mxu1 %vm2333_vm1, %v2334_v7  ;;  %v1688_v62 = vld [vmem:[%s2512_s0 + $0x10] sm:$0xff] }
 0x395   : > { %v1044_v8 = vmul.f32 %v2281_v6, %v2273_v53  ;;  %v1220_v10 = vpop.permute.xlu1 %1219  ;;  %2127 = vmatprep.subr.mxu1 %v2334_v7  ;;  %v2205_v0 = vpack.c.bf16 %v1689_v63, %v1688_v62  ;;  %v1693_v6 = vld [vmem:[%s2512_s0 + $0x38] sm:$0xff] }
 0x397   : > { %2120 = vmatmul.mubr.msk.f32.vlgmr.msra.gmra.mrb[6].mxu1 %vm875_vm6, %v1044_v8 }
 0x398   : > { %2128 = vmatpush3.msk.msra.mxu1 %vm879_vm5, %v1220_v10  ;;  %2129 = vmatprep.mubr.msk.f32.mxu1 %vm2333_vm1, %v2334_v7  ;;  %v2039_v10 = vld [vmem:[%s2753_s30] ss:$0 sm:$0xff] }
 0x399   : > { %2137 = vmatprep.subr.mxu1 %v2334_v7 }
 0x3ba   : > { %v1216_v11 = vpop.xlane.xlu0 %1215 }
 0x3bb   : > { %2282 = vrcp.f32 %v1216_v11 }
 0x3bc   : > { %2284 = vrcp.f32 %v1390_v5  ;;  %v1692_v5 = vld [vmem:[%s2512_s0 + $0x30] sm:$0xff] }
 0x3bd   : > { %v2211_v8 = vpack.c.bf16 %v1693_v6, %v1692_v5 }
 0x3be   : > { %v1394_v15 = vpop.permute.xlu0 %1393 }
 0x3c5   : > { %v2283_v12 = vpop.eup %2282 }
 0x3c6   : > { %v1218_v13 = vmul.f32 %v2283_v12, %v2277_v60  ;;  %v2285_v14 = vpop.eup %2284  ;;  %v1687_v60 = vld [vmem:[%s2512_s0 + $0x8] sm:$0xff] }
 0x3c7   : > { %v1392_v16 = vmul.f32 %v2285_v14, %v2275_v55  ;;  %v2202_v61 = vpack.c.bf16 %v1687_v60, %v1686_v59 }
 0x3c8   : > { %2130 = vmatmul.mubr.msk.f32.vlgmr.msra.gmra.mrb[8].mxu1 %vm875_vm6, %v1218_v13 }
 0x3c9   : > { %2138 = vmatpush3.msk.msra.mxu1 %vm879_vm5, %v1394_v15  ;;  %2139 = vmatprep.mubr.msk.f32.mxu1 %vm2333_vm1, %v2334_v7 }
 0x3ca   : > { %2195 = vmatprep.subr.bf16.mxu1 %v2332_v4 }
 0x3cc   : > { %2140 = vmatmul.mubr.msk.f32.vlgmr.msra.gmra.mrb[10].mxu1 %vm875_vm6, %v1392_v16 }
 0x3cd   : > { %2161 = vmatprep.mubr.msk.f32.mxu1 %vm2333_vm1, %v2334_v7  ;;  %2197 = vmatpush3.bf16.msra.mxu1 %v2196_v47 }
 0x3ce   : > { %2198 = vmatprep.subr.bf16.mxu1 %v2332_v4 }
 0x466   : > { %v948_v17 = vpop.f32.mrb[4].mxu1 }
 0x467   : > { %953 = vst.msk [vmem:[#allocation2] sm:$0x3f] %vm952_vm7, %v948_v17  ;;  %v2111_v18 = vpop.f32.mrb[5].mxu1 }
 0x46a   : > { %v1118_v19 = vpop.f32.mrb[6].mxu1 }
 0x46b   : > { %1123 = vrot.lane.b32.xlu1 %v1118_v19, %s2346_s4  ;;  %v2121_v20 = vpop.f32.mrb[7].mxu1 }
 0x49b   : > { %v1292_v27 = vpop.f32.mrb[8].mxu1 }
 0x49c   : > { %1297 = vrot.lane.b32.xlu0 %v1292_v27, %s2347_s8  ;;  %v2131_v28 = vpop.f32.mrb[9].mxu1 }
 0x49f   : > { %v1466_v29 = vpop.f32.mrb[10].mxu1 }
 0x4a0   : > { %1471 = vrot.lane.b32.xlu1 %v1466_v29, %s2348_s29  ;;  %v2141_v30 = vpop.f32.mrb[11].mxu1 }
 0x4dd   : > { %v1124_v31 = vpop.permute.xlu1 %1123 }
 0x4de   : > { %1127 = vst.msk [vmem:[#allocation2] sm:$0x3f] %vm1126_vm8, %v1124_v31 }
 0x50e   : > { %v1298_v32 = vpop.permute.xlu0 %1297 }
 0x50f   : > { %1301 = vst.msk [vmem:[#allocation2] sm:$0x3f] %vm1300_vm9, %v1298_v32 }
 0x512   : > { %v1472_v33 = vpop.permute.xlu1 %1471 }
 0x513   : > { %1475 = vst.msk [vmem:[#allocation2] sm:$0x3f] %vm1474_vm10, %v1472_v33 }
 0x51a   : > { %v1476_v34 = vld [vmem:[#allocation2] sm:$0x3f] }
 0x51b   : > { %2151 = vmatmul.mubr.msk.f32.vlgmr.msra.gmra.mrb[6].mxu0 %vm701_vm2, %v1476_v34 }
 0x51c   : > { %2180 = vmatprep.mubr.msk.f32.mxu0 %vm2333_vm1, %v2334_v7  ;;  %2203 = vmatpush3.bf16.msra.mxu0 %v2202_v61 }
 0x51d   : > { %2204 = vmatprep.subr.bf16.mxu0 %v2332_v4 }
 0x520   : > { %2206 = vmatpush3.bf16.msra.mxu0 %v2205_v0 }
 0x521   : > { %2207 = vmatprep.subr.bf16.mxu0 %v2332_v4 }
 0x524   : > { %2209 = vmatpush3.bf16.msra.mxu0 %v2208_v3 }
 0x525   : > { %2210 = vmatprep.subr.bf16.mxu0 %v2332_v4 }
 0x528   : > { %2212 = vmatpush3.bf16.msra.mxu0 %v2211_v8 }
 0x5ee   : > { %v1557_v36 = vpop.f32.mrb[6].mxu0 }
 0x5ef   : > { %v1558_v37 = vadd.f32 %v2035_v35, %v1557_v36  ;;  %v2152_v38 = vpop.f32.mrb[7].mxu0 }
 0x5f1   : > { %v1561_v39 = vadd.f32 %v1558_v37, %v2537_v9  ;;  %v1595_v9 = vld [vmem:[%s2498_s17 + $0x10] sm:$0xff]  ;;  %s2750_s17 = sld [smem:[#allocation13_spill]]  ;;  %v2043_v37 = vld [vmem:[%s673_s2] ss:$0 sm:$0xff] }
 0x5f2   : > { %v2199_v49 = vpack.c.bf16 %v1596_v48, %v1595_v9 }
 0x5f3   : > { %v1565_v40 = vsel %vm1564_vm11, %v1561_v39, 0.0 }
 0x5f4   : > { %1566 = vadd.xlane.f32.xlu0 %v1565_v40  ;;  %2200 = vmatpush3.bf16.msra.mxu1 %v2199_v49 }
 0x5f7   : > { %s2751_s1 = scalar_lea.vmem %s2750_s17, %s2460_s20 }
 0x5f8   : > { %v2038_v56 = vld [vmem:[%s2751_s1] ss:$0 sm:$0xff] }
 0x681   : > { %v1567_v41 = vpop.xlane.xlu0 %1566 }
 0x682   : > { %v1569_v42 = vmul.f32 0.03125, %v1567_v41 }
 0x684   : > { %v1570_v7 = vsub.f32 %v1561_v39, %v1569_v42  ;;  %v2044_v39 = vld [vmem:[%s676_s7] ss:$0 sm:$0xff] }
 0x686   : > { %v1571_v43 = vmul.f32 %v1570_v7, %v1570_v7 }
 0x688   : > { %v1572_v44 = vsel %vm1564_vm11, %v1571_v43, 0.0 }
 0x689   : > { %1573 = vadd.xlane.f32.xlu1 %v1572_v44 }
 0x716   : > { %v1574_v50 = vpop.xlane.xlu1 %1573 }
 0x717   : > { %v1575_v51 = vmul.f32 0.03125, %v1574_v50 }
 0x719   : > { %v1576_v52 = vadd.f32 1e-12, %v1575_v51 }
 0x71b   : > { %2286 = vrsqrt.f32 %v1576_v52 }
 0x725   : > { %v2287_v53 = vpop.eup %2286 }
 0x726   : > { %v1578_v55 = vmul.f32 %v2287_v53, %v1570_v7 }
 0x728   : > { %v1585_v57 = vmul.f32 %v2037_v54, %v1578_v55 }
 0x72a   : > { %v1592_v58 = vadd.f32 %v2038_v56, %v1585_v57 }
 0x72c   : > { %2162 = vmatmul.mubr.msk.f32.vlgmr.msra.gmra.mrb[12].mxu1 %vm701_vm2, %v1592_v58 }
 0x7ff   : > { %v1673_v11 = vpop.f32.mrb[12].mxu1 }
 0x800   : > { %v1674_v12 = vadd.f32 %v2039_v10, %v1673_v11  ;;  %v2163_v13 = vpop.f32.mrb[13].mxu1 }
 0x802   : > { %v1678_v14 = vmul.f32 0.044715, %v1674_v12  ;;  %v1677_v20 = vmul.f32 0.5, %v1674_v12 }
 0x804   : > { %v1679_v15 = vmul.f32 %v1678_v14, %v1674_v12 }
 0x806   : > { %v1680_v16 = vmul.f32 %v1679_v15, %v1674_v12 }
 0x808   : > { %v1681_v17 = vadd.f32 %v1680_v16, %v1674_v12 }
 0x80a   : > { %v1682_v18 = vmul.f32 0.7978846, %v1681_v17 }
 0x80c   : > { %2288 = vtanh.f32 %v1682_v18 }
 0x816   : > { %v2289_v19 = vpop.eup %2288 }
 0x817   : > { %v1684_v21 = vadd.f32 1.0, %v2289_v19 }
 0x819   : > { %v1685_v4 = vmul.f32 %v1684_v21, %v1677_v20 }
 0x81b   : > { %2181 = vmatmul.mubr.msk.f32.vlgmr.msra.gmra.mrb[8].mxu0 %vm1694_vm12, %v1685_v4 }
 0x8ee   : > { %v1764_v22 = vpop.f32.mrb[8].mxu0 }
 0x8ef   : > { %v1768_v24 = vadd.f32 %v1764_v22, %v1592_v58  ;;  %v2182_v25 = vpop.f32.mrb[9].mxu0 }
 0x8f1   : > { %v1776_v26 = vadd.f32 %v2042_v23, %v1768_v24 }
 0x8f3   : > { %v1779_v27 = vsel %vm1564_vm11, %v1776_v26, 0.0 }
 0x8f4   : > { %1780 = vadd.xlane.f32.xlu0 %v1779_v27 }
 0x981   : > { %v1781_v28 = vpop.xlane.xlu0 %1780 }
 0x982   : > { %v1782_v29 = vmul.f32 0.03125, %v1781_v28 }
 0x984   : > { %v1783_v30 = vsub.f32 %v1776_v26, %v1782_v29 }
 0x986   : > { %v1784_v31 = vmul.f32 %v1783_v30, %v1783_v30 }
 0x988   : > { %v1785_v32 = vsel %vm1564_vm11, %v1784_v31, 0.0 }
 0x989   : > { %1786 = vadd.xlane.f32.xlu0 %v1785_v32 }
 0xa16   : > { %v1787_v33 = vpop.xlane.xlu0 %1786 }
 0xa17   : > { %v1788_v34 = vmul.f32 0.03125, %v1787_v33 }
 0xa19   : > { %v1789_v35 = vadd.f32 1e-12, %v1788_v34 }
 0xa1b   : > { %2290 = vrsqrt.f32 %v1789_v35 }
 0xa25   : > { %v2291_v36 = vpop.eup %2290 }
 0xa26   : > { %v1791_v38 = vmul.f32 %v2291_v36, %v1783_v30 }
 0xa28   : > { %v1798_v40 = vmul.f32 %v2043_v37, %v1791_v38 }
 0xa2a   : > { %v1805_v41 = vadd.f32 %v2044_v39, %v1798_v40 }
 0xa2c   : > { %1806 = vst.msk [vmem:[%s2525_s9] sm:$0x3f] %vm1564_vm11, %v1805_v41 }
 0xa2d PF: > { %s2756_s12 = sld [smem:[#allocation6_spill]]  ;;  %s2757_s29 = sld [smem:[#allocation4_spill]] }
 0xa2e   : > { %s2758_s30 = sld [smem:[#allocation5_spill]]  ;;  %s2759_s15 = sld [smem:[#allocation7_spill]] }
 0xa2f   : > { %s2760_s16 = sld [smem:[#allocation8_spill]] }
 0xa33   : > { %s24_s17 = sadd.s32 1, %s2756_s12  }
 0xa34   : > { %p21_p8 = scmp.ge.s32.totalorder %s24_s17, 34  }
 0xa36   :  { %23 = sbr.rel (!%p21_p8) target bundleno = 11 (0xb), region = 149 }

</bundles_post_ra>
